<compile_context>
chip_gen: v7x
topology: tpu7x:2x2x1
jax: 0.10.0
libtpu: 0.0.40
codegen_flags: <defaults>
</compile_context>

<pallas_src>
import jax
import jax.numpy as jnp
from jax.experimental import pallas as pl
from jax.experimental.pallas import tpu as pltpu


def _round_up(x, m):
    return ((x + m - 1) // m) * m


def fc_encoder_kernel(x_ref, w1_ref, b1_ref, w2_ref, b2_ref, w3_ref, b3_ref,
                      o_ref):
    # Cast inside the kernel (torch `.float()`); f32 input makes this a no-op,
    # bf16 input halves the HBM read upstream.
    x = x_ref[...].astype(jnp.float32)

    # Layer 1: Linear + ReLU
    h = jnp.dot(x, w1_ref[...], preferred_element_type=jnp.float32) + b1_ref[...]
    h = jnp.maximum(h, 0.0)

    # Layer 2: Linear + ReLU
    h = jnp.dot(h, w2_ref[...], preferred_element_type=jnp.float32) + b2_ref[...]
    h = jnp.maximum(h, 0.0)

    # Layer 3: Linear (output spans the full class dim -> no lane masking needed)
    logits = jnp.dot(h, w3_ref[...], preferred_element_type=jnp.float32) + b3_ref[...]

    # Numerically stable log_softmax over dim=1 (last dim of the 2D logits).
    m = jnp.max(logits, axis=-1, keepdims=True)
    shifted = logits - m
    lse = jnp.log(jnp.sum(jnp.exp(shifted), axis=-1, keepdims=True))
    o_ref[...] = shifted - lse


def fc_encoder_forward(x, params, *, max_block_rows=2048, target_blocks=4):
    """x: (B, input_feat, windows_len). Returns (B, output) float32 log-probs."""
    B = x.shape[0]
    x_flat = x.reshape(B, -1)  # same as torch .view(B, -1); dtype preserved

    w1, b1, w2, b2, w3, b3 = params
    in_dim, units = w1.shape
    out_dim = w3.shape[1]

    # Batch tiling: sublane-aligned TM sized for >= `target_blocks` grid steps
    # (pipelining + v7x core sharding), capped for v5e VMEM, < 8 rows of waste.
    tm = _round_up(pl.cdiv(B, target_blocks), 8)
    tm = max(8, min(tm, max_block_rows))
    n_blocks = pl.cdiv(B, tm)  # ragged last tile handled by Pallas (no jnp.pad)

    def weight_spec(shape):
        # Full-array block, same block index every grid step -> VMEM-resident.
        return pl.BlockSpec(shape, lambda i: (0, 0))

    out = pl.pallas_call(
        fc_encoder_kernel,
        out_shape=jax.ShapeDtypeStruct((B, out_dim), jnp.float32),
        grid=(n_blocks,),
        in_specs=[
            pl.BlockSpec((tm, in_dim), lambda i: (i, 0)),
            weight_spec((in_dim, units)), weight_spec((1, units)),
            weight_spec((units, units)), weight_spec((1, units)),
            weight_spec((units, out_dim)), weight_spec((1, out_dim)),
        ],
        out_specs=pl.BlockSpec((tm, out_dim), lambda i: (i, 0)),
        compiler_params=pltpu.CompilerParams(
            dimension_semantics=("parallel",),
        ),
    )(x_flat, w1, b1, w2, b2, w3, b3)

    return out


def init_params(key, input_feat, windows_len=11, units=32, output=5):
    in_dim = input_feat * windows_len
    k1, k2, k3, k4, k5, k6 = jax.random.split(key, 6)

    # Deterministic synthetic init (uniform, PyTorch-like scale); weights stored as (in, out).
    def lin(kw, kb, fan_in, fan_out):
        bound = 1.0 / jnp.sqrt(fan_in)
        w = jax.random.uniform(kw, (fan_in, fan_out), jnp.float32, -bound, bound)
        b = jax.random.uniform(kb, (1, fan_out), jnp.float32, -bound, bound)
        return w, b

    w1, b1 = lin(k1, k2, in_dim, units)
    w2, b2 = lin(k3, k4, units, units)
    w3, b3 = lin(k5, k6, units, output)
    return (w1, b1, w2, b2, w3, b3)


def fc_encoder_reference(x, params):
    """Pure-JAX reference for correctness check."""
    B = x.shape[0]
    x = x.reshape(B, -1).astype(jnp.float32)
    w1, b1, w2, b2, w3, b3 = params
    h = jnp.maximum(x @ w1 + b1, 0.0)
    h = jnp.maximum(h @ w2 + b2, 0.0)
    logits = h @ w3 + b3
    return jax.nn.log_softmax(logits, axis=1)


if __name__ == "__main__":
    key = jax.random.PRNGKey(0)
    kx, kx2, kp = jax.random.split(key, 3)

    input_feat, windows_len = 4, 11
    units, output = 32, 5
    params = init_params(kp, input_feat, windows_len, units, output)

    # Case 1: small batch, evenly tiled.
    B = 8
    x = jax.random.normal(kx, (B, input_feat, windows_len), dtype=jnp.float32)
    out = jax.block_until_ready(fc_encoder_forward(x, params))
    ref = fc_encoder_reference(x, params)
    assert out.shape == (B, output)
    assert jnp.allclose(out, ref, atol=1e-5, rtol=1e-5), "mismatch vs reference (B=8)"

    # Case 2: ragged batch (exercises the un-padded last tile path).
    B2 = 13
    x2 = jax.random.normal(kx2, (B2, input_feat, windows_len), dtype=jnp.float32)
    out2 = jax.block_until_ready(fc_encoder_forward(x2, params))
    ref2 = fc_encoder_reference(x2, params)
    assert out2.shape == (B2, output)
    assert jnp.allclose(out2, ref2, atol=1e-5, rtol=1e-5), "mismatch vs reference (B=13)"

    print("KERNEL_OK")
</pallas_src>

<mosaic_0001>
module attributes {stable_mosaic.version = 11 : i64} {
  func.func @fc_encoder_kernel(%arg0: i32, %arg1: memref<8x44xf32, #tpu.memory_space<vmem>>, %arg2: memref<44x32xf32, #tpu.memory_space<vmem>>, %arg3: memref<1x32xf32, #tpu.memory_space<vmem>>, %arg4: memref<32x32xf32, #tpu.memory_space<vmem>>, %arg5: memref<1x32xf32, #tpu.memory_space<vmem>>, %arg6: memref<32x5xf32, #tpu.memory_space<vmem>>, %arg7: memref<1x5xf32, #tpu.memory_space<vmem>>, %arg8: memref<8x5xf32, #tpu.memory_space<vmem>>) attributes {dimension_semantics = [#tpu.dimension_semantics<parallel>], iteration_bounds = array<i64: 1>, scalar_prefetch = 0 : i64, scratch_operands = 0 : i64, tpu.core_type = #tpu.core_type<tc>, window_params = [{transform_indices = @transform_0, window_bounds = array<i64: 8, 44>}, {pipeline_mode = #tpu.pipeline_mode<synchronous>, transform_indices = @transform_1, window_bounds = array<i64: 44, 32>}, {pipeline_mode = #tpu.pipeline_mode<synchronous>, transform_indices = @transform_2, window_bounds = array<i64: 1, 32>}, {pipeline_mode = #tpu.pipeline_mode<synchronous>, transform_indices = @transform_3, window_bounds = array<i64: 32, 32>}, {pipeline_mode = #tpu.pipeline_mode<synchronous>, transform_indices = @transform_4, window_bounds = array<i64: 1, 32>}, {pipeline_mode = #tpu.pipeline_mode<synchronous>, transform_indices = @transform_5, window_bounds = array<i64: 32, 5>}, {pipeline_mode = #tpu.pipeline_mode<synchronous>, transform_indices = @transform_6, window_bounds = array<i64: 1, 5>}, {transform_indices = @transform_7, window_bounds = array<i64: 8, 5>}]} {
    %c0 = arith.constant 0 : index
    %c0_0 = arith.constant 0 : index
    %0 = vector.load %arg1[%c0, %c0_0] : memref<8x44xf32, #tpu.memory_space<vmem>>, vector<8x44xf32>
    %c0_1 = arith.constant 0 : index
    %c0_2 = arith.constant 0 : index
    %1 = vector.load %arg2[%c0_1, %c0_2] : memref<44x32xf32, #tpu.memory_space<vmem>>, vector<44x32xf32>
    %cst = arith.constant dense<0.000000e+00> : vector<8x32xf32>
    %2 = tpu.matmul %0, %1, %cst {dimension_numbers = #tpu.dot_dimension_numbers<[1], [0], [0], [1], [0, 0, 1, 1], [], []>} : vector<8x44xf32>, vector<44x32xf32>, vector<8x32xf32> -> vector<8x32xf32>
    %c0_3 = arith.constant 0 : index
    %c0_4 = arith.constant 0 : index
    %3 = vector.load %arg3[%c0_3, %c0_4] : memref<1x32xf32, #tpu.memory_space<vmem>>, vector<1x32xf32>
    %4 = vector.broadcast %3 : vector<1x32xf32> to vector<8x32xf32>
    %5 = arith.addf %2, %4 : vector<8x32xf32>
    %cst_5 = arith.constant 0.000000e+00 : f32
    %6 = vector.broadcast %cst_5 : f32 to vector<8x32xf32>
    %7 = arith.maximumf %5, %6 : vector<8x32xf32>
    %c0_6 = arith.constant 0 : index
    %c0_7 = arith.constant 0 : index
    %8 = vector.load %arg4[%c0_6, %c0_7] : memref<32x32xf32, #tpu.memory_space<vmem>>, vector<32x32xf32>
    %cst_8 = arith.constant dense<0.000000e+00> : vector<8x32xf32>
    %9 = tpu.matmul %7, %8, %cst_8 {dimension_numbers = #tpu.dot_dimension_numbers<[1], [0], [0], [1], [0, 0, 1, 1], [], []>} : vector<8x32xf32>, vector<32x32xf32>, vector<8x32xf32> -> vector<8x32xf32>
    %c0_9 = arith.constant 0 : index
    %c0_10 = arith.constant 0 : index
    %10 = vector.load %arg5[%c0_9, %c0_10] : memref<1x32xf32, #tpu.memory_space<vmem>>, vector<1x32xf32>
    %11 = vector.broadcast %10 : vector<1x32xf32> to vector<8x32xf32>
    %12 = arith.addf %9, %11 : vector<8x32xf32>
    %cst_11 = arith.constant 0.000000e+00 : f32
    %13 = vector.broadcast %cst_11 : f32 to vector<8x32xf32>
    %14 = arith.maximumf %12, %13 : vector<8x32xf32>
    %c0_12 = arith.constant 0 : index
    %c0_13 = arith.constant 0 : index
    %15 = vector.load %arg6[%c0_12, %c0_13] : memref<32x5xf32, #tpu.memory_space<vmem>>, vector<32x5xf32>
    %cst_14 = arith.constant dense<0.000000e+00> : vector<8x5xf32>
    %16 = tpu.matmul %14, %15, %cst_14 {dimension_numbers = #tpu.dot_dimension_numbers<[1], [0], [0], [1], [0, 0, 1, 1], [], []>} : vector<8x32xf32>, vector<32x5xf32>, vector<8x5xf32> -> vector<8x5xf32>
    %c0_15 = arith.constant 0 : index
    %c0_16 = arith.constant 0 : index
    %17 = vector.load %arg7[%c0_15, %c0_16] : memref<1x5xf32, #tpu.memory_space<vmem>>, vector<1x5xf32>
    %18 = vector.broadcast %17 : vector<1x5xf32> to vector<8x5xf32>
    %19 = arith.addf %16, %18 : vector<8x5xf32>
    %cst_17 = arith.constant dense<0xFF800000> : vector<8xf32>
    %20 = vector.multi_reduction <maximumf>, %19, %cst_17 [1] : vector<8x5xf32> to vector<8xf32>
    %21 = vector.shape_cast %20 : vector<8xf32> to vector<8x1xf32>
    %22 = vector.broadcast %21 : vector<8x1xf32> to vector<8x5xf32>
    %23 = arith.subf %19, %22 : vector<8x5xf32>
    %24 = math.exp %23 : vector<8x5xf32>
    %cst_18 = arith.constant dense<0.000000e+00> : vector<8xf32>
    %25 = vector.multi_reduction <add>, %24, %cst_18 [1] : vector<8x5xf32> to vector<8xf32>
    %26 = vector.shape_cast %25 : vector<8xf32> to vector<8x1xf32>
    %27 = math.log %26 : vector<8x1xf32>
    %28 = vector.broadcast %27 : vector<8x1xf32> to vector<8x5xf32>
    %29 = arith.subf %23, %28 : vector<8x5xf32>
    %c0_19 = arith.constant 0 : index
    %c0_20 = arith.constant 0 : index
    %30 = vector.load %arg8[%c0_19, %c0_20] : memref<8x5xf32, #tpu.memory_space<vmem>>, vector<8x5xf32>
    tpu.vector_store %arg8[%c0_19, %c0_20], %29 {strides = array<i32>} : memref<8x5xf32, #tpu.memory_space<vmem>>, vector<8x5xf32>,
    return
  }
  func.func @transform_0(%arg0: i32) -> (i32, i32) {
    %c0_i32 = arith.constant 0 : i32
    %c0_i32_0 = arith.constant 0 : i32
    return %arg0, %c0_i32 : i32, i32
  }
  func.func @transform_1(%arg0: i32) -> (i32, i32) {
    %c0_i32 = arith.constant 0 : i32
    %c0_i32_0 = arith.constant 0 : i32
    %c0_i32_1 = arith.constant 0 : i32
    return %c0_i32, %c0_i32_0 : i32, i32
  }
  func.func @transform_2(%arg0: i32) -> (i32, i32) {
    %c0_i32 = arith.constant 0 : i32
    %c0_i32_0 = arith.constant 0 : i32
    %c0_i32_1 = arith.constant 0 : i32
    return %c0_i32, %c0_i32_0 : i32, i32
  }
  func.func @transform_3(%arg0: i32) -> (i32, i32) {
    %c0_i32 = arith.constant 0 : i32
    %c0_i32_0 = arith.constant 0 : i32
    %c0_i32_1 = arith.constant 0 : i32
    return %c0_i32, %c0_i32_0 : i32, i32
  }
  func.func @transform_4(%arg0: i32) -> (i32, i32) {
    %c0_i32 = arith.constant 0 : i32
    %c0_i32_0 = arith.constant 0 : i32
    %c0_i32_1 = arith.constant 0 : i32
    return %c0_i32, %c0_i32_0 : i32, i32
  }
  func.func @transform_5(%arg0: i32) -> (i32, i32) {
    %c0_i32 = arith.constant 0 : i32
    %c0_i32_0 = arith.constant 0 : i32
    %c0_i32_1 = arith.constant 0 : i32
    return %c0_i32, %c0_i32_0 : i32, i32
  }
  func.func @transform_6(%arg0: i32) -> (i32, i32) {
    %c0_i32 = arith.constant 0 : i32
    %c0_i32_0 = arith.constant 0 : i32
    %c0_i32_1 = arith.constant 0 : i32
    return %c0_i32, %c0_i32_0 : i32, i32
  }
  func.func @transform_7(%arg0: i32) -> (i32, i32) {
    %c0_i32 = arith.constant 0 : i32
    %c0_i32_0 = arith.constant 0 : i32
    return %arg0, %c0_i32 : i32, i32
  }
}

</mosaic_0001>

<bundles_post_ra>
// kernel: tpu_custom_call.1
= control target key start
LH: loop header
LB: loop body
LE: loop exit
PB: predicated region body
PF: predicated region fallthrough
CT: control target
= control target key end

     0   :  { %v434_v3 = vmov 0.0|0.0   ;;  %vm435_vm0 = vmmov 0   ;;  %v436_v6 = vmov 0.0   ;;  %s553_s0 = inlined_call_operand.vmem [shape: f32[8,44], index: 0, kind: input, shape index: {}]   ;;  %s554_s1 = inlined_call_operand.vmem [shape: f32[44,32], index: 1, kind: input, shape index: {}]   ;;  %s555_s2 = inlined_call_operand.vmem [shape: f32[1,32], index: 2, kind: input, shape index: {}]   ;;  %s556_s3 = inlined_call_operand.vmem [shape: f32[32,32], index: 3, kind: input, shape index: {}]   ;;  %s557_s4 = inlined_call_operand.vmem [shape: f32[1,32], index: 4, kind: input, shape index: {}]   ;;  %s558_s5 = inlined_call_operand.vmem [shape: f32[32,5], index: 5, kind: input, shape index: {}]   ;;  %s559_s6 = inlined_call_operand.vmem [shape: f32[1,5], index: 6, kind: input, shape index: {}]   ;;  %s560_s7 = inlined_call_operand.hbm [shape: f32[8,5], index: 7, kind: output, shape index: {}]  }
   0x1   :  { %v28_v0 = vld [vmem:[%s554_s1] sm:$0xff]  ;;  %v29_v1 = vld [vmem:[%s554_s1 + $0x8] sm:$0xff]  ;;  %v30_v2 = vld [vmem:[%s554_s1 + $0x10] sm:$0xff]  ;;  %379 = vmatprep.subr.bf16.mxu0 %v434_v3  ;;  %389 = vmatprep.subr.bf16.mxu1 %v434_v3 }
   0x2   :  { %v380_v4 = vpack.c.bf16 %v29_v1, %v28_v0  ;;  %v31_v5 = vld [vmem:[%s554_s1 + $0x18] sm:$0xff]  ;;  %354 = vmatprep.mubr.msk.f32.mxu0 %vm435_vm0, %v436_v6  ;;  %v120_v7 = vld [vmem:[%s556_s3] sm:$0xff]  ;;  %365 = vmatprep.mubr.msk.f32.mxu1 %vm435_vm0, %v436_v6  ;;  %v121_v9 = vld [vmem:[%s556_s3 + $0x8] sm:$0xff] }
   0x3   :  { %v383_v8 = vpack.c.bf16 %v31_v5, %v30_v2 }
   0x4   :  { %381 = vmatpush3.bf16.msra.mxu0 %v380_v4 }
   0x5   :  { %12 = vsyncpa [#allocation3], 0  ;;  %382 = vmatprep.subr.bf16.mxu0 %v434_v3  ;;  %v32_v10 = vld [vmem:[%s554_s1 + $0x20] sm:$0xff]  ;;  %v33_v11 = vld [vmem:[%s554_s1 + $0x28] sm:$0xf]  ;;  %v390_v12 = vpack.c.bf16 %v121_v9, %v120_v7  ;;  %vm45_vm1 = vcmask 1043456  }
   0x6   :  { %v386_v13 = vpack.c.bf16 %v33_v11, %v32_v10  ;;  %vm437_vm2 = vmmov 1   ;;  %v27_v14 = vld [vmem:[%s553_s0] sm:$0xff]  ;;  %vm41_vm4 = vcmask 359424   ;;  %v122_v15 = vld [vmem:[%s556_s3 + $0x10] sm:$0xff]  ;;  %v123_v16 = vld [vmem:[%s556_s3 + $0x18] sm:$0xff]  ;;  %vm131_vm5 = vcmask 261120  }
   0x7   :  { %391 = vmatpush3.bf16.msra.mxu1 %v390_v12  ;;  %vm387_vm3 = vmpackc.low %vm45_vm1, %vm437_vm2  ;;  %v393_v17 = vpack.c.bf16 %v123_v16, %v122_v15  ;;  %v318_v18 = vld [vmem:[%s555_s2] ss:$0 sm:$0xff]  ;;  %v207_v20 = vld [vmem:[%s558_s5 + $0x8] sm:$0xff]  ;;  %vm290_vm6 = vcmask 39936  }
   0x8   :  { %384 = vmatpush3.bf16.msra.mxu0 %v383_v8  ;;  %392 = vmatprep.subr.bf16.mxu1 %v434_v3  ;;  %v206_v19 = vld [vmem:[%s558_s5] sm:$0xff]  ;;  %v208_v26 = vld [vmem:[%s558_s5 + $0x10] sm:$0xff]  ;;  %v209_v27 = vld [vmem:[%s558_s5 + $0x18] sm:$0xff] }
   0x9   :  { %385 = vmatprep.subr.bf16.mxu0 %v434_v3  ;;  %v396_v24 = vpack.c.bf16 %v207_v20, %v206_v19  ;;  %v399_v28 = vpack.c.bf16 %v209_v27, %v208_v26  ;;  %v321_v29 = vld [vmem:[%s557_s4] ss:$0 sm:$0xff]  ;;  %s438_s4 = smov [#allocation2]  }
   0xa   :  { %v323_v34 = vld [vmem:[%s559_s6] ss:$0 sm:$0xff]  ;;  %s310_s5 = sshll.u32 %s438_s4, 4  ;;  %s311_s5 = int_to_ptr.vmem [resolvable:$true] %s310_s5 }
   0xb   :  { %394 = vmatpush3.bf16.msra.mxu1 %v393_v17  ;;  %s410_s6 = scalar_lea.vmem %s311_s5, 128  ;;  %p415_p1 = scmp.lt.s32.totalorder %s311_s5, %s311_s5 }
   0xc   :  { %388 = vmatpush3.bf16.msk.msra.mxu0 %vm387_vm3, %v386_v13  ;;  %395 = vmatprep.subr.bf16.mxu1 %v434_v3  ;;  %p411_p0 = scmp.ne.s32.totalorder %s311_s5, %s410_s6  ;;  %p416_p2 = scmp.lt.s32.totalorder %s410_s6, %s410_s6 }
   0xe   :  { %p417_p3 = por %p416_p2, %p415_p1 }
   0xf   :  { %355 = vmatmul.mubr.msk.f32.vlgmr.msra.gmra.mrb[0].mxu0 %vm41_vm4, %v27_v14 }
  0x10   :  { %p418_p4 = pnand %p417_p3, %p411_p0 }
  0xe2   :  { %v115_v21 = vpop.f32.mrb[0].mxu0 }
  0xe3   :  { %v116_v22 = vadd.f32 %v318_v18, %v115_v21  ;;  %v356_v23 = vpop.f32.mrb[1].mxu0 }
  0xe5   :  { %v119_v25 = vmax.f32 %v116_v22, 0.0 }
  0xe7   :  { %366 = vmatmul.mubr.msk.f32.vlgmr.msra.gmra.mrb[0].mxu1 %vm131_vm5, %v119_v25 }
  0xe8   :  { %397 = vmatpush3.bf16.msra.mxu1 %v396_v24  ;;  %376 = vmatprep.mubr.msk.f32.mxu1 %vm435_vm0, %v436_v6 }
  0xe9   :  { %398 = vmatprep.subr.bf16.mxu1 %v434_v3 }
  0xec   :  { %400 = vmatpush3.bf16.msra.mxu1 %v399_v28 }
 0x1ba   :  { %v201_v30 = vpop.f32.mrb[0].mxu1 }
 0x1bb   :  { %v202_v31 = vadd.f32 %v321_v29, %v201_v30  ;;  %v367_v32 = vpop.f32.mrb[1].mxu1 }
 0x1bd   :  { %v205_v33 = vmax.f32 %v202_v31, 0.0 }
 0x1bf   :  { %377 = vmatmul.mubr.msk.f32.vlgmr.msra.gmra.mrb[2].mxu1 %vm131_vm5, %v205_v33 }
 0x292   :  { %v286_v35 = vpop.f32.mrb[2].mxu1 }
 0x293   :  { %v287_v36 = vadd.f32 %v323_v34, %v286_v35  ;;  %v378_v37 = vpop.f32.mrb[3].mxu1 }
 0x295   :  { %v291_v38 = vsel %vm290_vm6, %v287_v36, -inf }
 0x296   :  { %292 = vmax.xlane.f32.xlu0 %v291_v38 }
 0x323   :  { %v293_v39 = vpop.xlane.xlu0 %292 }
 0x324   :  { %v294_v40 = vsub.f32 %v287_v36, %v293_v39 }
 0x326   :  { %v295_v41 = vmul.f32 1.442695, %v294_v40 }
 0x328   :  { %406 = vpow2.f32 %v295_v41 }
 0x332   :  { %v407_v42 = vpop.eup %406 }
 0x333   :  { %v297_v43 = vsel %vm290_vm6, %v407_v42, 0.0 }
 0x334   :  { %298 = vadd.xlane.f32.xlu0 %v297_v43 }
 0x3c1   :  { %v299_v44 = vpop.xlane.xlu0 %298 }
 0x3c2   :  { %408 = vlog2.f32 %v299_v44 }
 0x3cc   :  { %v409_v45 = vpop.eup %408 }
 0x3cd   :  { %v301_v46 = vmul.f32 0.6931472, %v409_v45 }
 0x3cf   :  { %v302_v47 = vsub.f32 %v294_v40, %v301_v46 }
 0x3d1   :  { %303 = vst.msk [vmem:[#allocation2] sm:$0xff] %vm290_vm6, %v302_v47 }
 0x3d2   :  { %421 = shalt.err (!%p418_p4)
}
 0x3d3   :  { %s422_s12 = scalar_lea.hbm %s560_s7, 128 }
 0x3d4   :  { %p423_p5 = scmp.ne.s32.totalorder %s560_s7, %s422_s12  ;;  %p426_p6 = scmp.lt.u32.totalorder %s422_s12, %s560_s7 }
 0x3d6   :  { %p428_p7 = pnand %p426_p6, %p423_p5 }
 0x3d8   :  { %431 = shalt.err (!%p428_p7)
}
 0x3d9   :  { %313 = dma.vmem_to_hbm [thread:$0]  %s311_s5, 128, %s560_s7, [#allocation3]  }
 0x3da   :  { %432 = dma.done.wait [#allocation3], 128  }
 0x3db   :  { %433 = vsyncadd [#allocation3], 4294967168 }
 0x3dc   :  { %317 = vsyncpa [#allocation3], 1 }

</bundles_post_ra>
